<compile_context>
chip_gen: v5e
topology: v5e:2x2
jax: 0.10.0
libtpu: 0.0.40
codegen_flags: <defaults>
</compile_context>

<pallas_src>
import jax
import jax.numpy as jnp
from jax.experimental import pallas as pl
from jax.experimental.pallas import tpu as pltpu

_LANES = 128


# --------------------------------------------------------------------------
# Path 1: zero-copy, aliased no-op kernel (highest-value optimization).
# --------------------------------------------------------------------------
def _noop_kernel(noise_ref, out_ref):
    # Output buffer is aliased to the input buffer; forward() is a pure
    # identity, so no bytes need to move.  Intentionally empty body.
    del noise_ref, out_ref


def _aliased_forward(noise: jax.Array) -> jax.Array:
    return pl.pallas_call(
        _noop_kernel,
        out_shape=jax.ShapeDtypeStruct(noise.shape, noise.dtype),
        in_specs=[pl.BlockSpec(memory_space=pl.ANY)],
        out_specs=pl.BlockSpec(memory_space=pl.ANY),
        input_output_aliases={0: 0},
        compiler_params=pltpu.CompilerParams(has_side_effects=True),
    )(noise)


# --------------------------------------------------------------------------
# Path 2: non-donating lane-dense copy kernel (safe default).
# --------------------------------------------------------------------------
def _copy_kernel(noise_ref, out_ref):
    out_ref[...] = noise_ref[...]


def _sublane_multiple(dtype) -> int:
    # Sub-32-bit dtypes pack along sublanes: 8 rows/vreg for 32-bit,
    # 16 for bf16/fp16, 32 for int8/fp8.
    itemsize = jnp.dtype(dtype).itemsize
    return max(8, 32 // max(itemsize, 1))


def _largest_aligned_divisor(rows: int, max_rows: int, align: int) -> int:
    """Largest divisor of `rows` that is a multiple of `align` and <= max_rows.

    Caller guarantees rows % align == 0, so `align` itself always qualifies.
    """
    d = min(rows, (max_rows // align) * align)
    while d >= align:
        if rows % d == 0:
            return d
        d -= align
    return align


def _copy_forward(noise: jax.Array) -> jax.Array:
    orig_shape = noise.shape
    dtype = noise.dtype
    total = noise.size
    itemsize = jnp.dtype(dtype).itemsize
    align = _sublane_multiple(dtype)
    chunk = _LANES * align

    # Lane-dense flattened view; pad (and later slice) if the element count is
    # not a multiple of 128 * sublane_multiple so every store is a full-width
    # unmasked vst and no single block has to hold the whole tensor.
    flat = noise.reshape(-1)
    padded_total = pl.cdiv(total, chunk) * chunk
    pad = padded_total - total
    if pad:
        flat = jnp.pad(flat, (0, pad))
    rows = padded_total // _LANES
    x2d = flat.reshape(rows, _LANES)

    # ~4 MiB blocks; block_rows is an exact divisor of rows (no ragged step)
    # and a multiple of the dtype-aware sublane packing factor.
    max_rows = max(align, (4 << 20) // (_LANES * itemsize))
    block_rows = _largest_aligned_divisor(rows, max_rows, align)
    steps = rows // block_rows

    block_bytes = block_rows * _LANES * itemsize
    # in + out, double-buffered = 4x block bytes, plus headroom.  Stays well
    # under v7x's 64 MiB physical VMEM and overrides v5e's 16 MiB scoped
    # default when needed.
    vmem_limit = min(max(16 << 20, 4 * block_bytes + (2 << 20)), 24 << 20)

    # Megacore sharding only helps on v7x and only when there are >= 2 steps.
    semantics = ("parallel",) if steps >= 2 else ("arbitrary",)

    out = pl.pallas_call(
        _copy_kernel,
        out_shape=jax.ShapeDtypeStruct((rows, _LANES), dtype),
        grid=(steps,),
        in_specs=[pl.BlockSpec((block_rows, _LANES), lambda i: (i, 0))],
        out_specs=pl.BlockSpec((block_rows, _LANES), lambda i: (i, 0)),
        compiler_params=pltpu.CompilerParams(
            dimension_semantics=semantics,
            vmem_limit_bytes=vmem_limit,
        ),
    )(x2d)

    out_flat = out.reshape(-1)
    if pad:
        out_flat = out_flat[:total]
    return out_flat.reshape(orig_shape)


# --------------------------------------------------------------------------
# Public wrapper: Noise.forward()
# --------------------------------------------------------------------------
def noise_forward(noise: jax.Array, *, donate: bool = False) -> jax.Array:
    """Pallas equivalent of Noise.forward(): returns the noise parameter.

    donate=True  -> zero-copy aliased no-op kernel; the input buffer is
                    donated (do not reuse the passed-in array afterwards).
    donate=False -> non-donating lane-dense copy kernel at HBM bandwidth.
    """
    if donate:
        return _aliased_forward(noise)
    return _copy_forward(noise)


def init_noise_param(key, batch_size, *dim, dtype=jnp.float32):
    """Stand-in for torch.randn(batch_size, *dim) at module construction."""
    # TODO(synk): parameter initialization happens at nn.Module construction in
    # PyTorch, not in forward(); it is done here with host-side jax.random.
    return jax.random.normal(key, (batch_size, *dim), dtype=dtype)


if __name__ == "__main__":
    key = jax.random.PRNGKey(0)

    # Small shapes consistent with the module: Noise(batch_size=2, 4, 16, 16)
    batch_size, C, H, W = 2, 4, 16, 16
    noise_param = init_noise_param(key, batch_size, C, H, W)

    # Independent reference copy for the correctness checks.
    expected = jnp.copy(noise_param)

    # 1) Safe (non-donating) copy-kernel path.
    out_copy = noise_forward(noise_param, donate=False)
    out_copy = jax.block_until_ready(out_copy)
    assert out_copy.shape == (batch_size, C, H, W)
    assert out_copy.dtype == expected.dtype
    assert bool(jnp.array_equal(out_copy, expected))

    # 2) Zero-copy aliased no-op path (donates its input, so pass a fresh copy).
    out_alias = noise_forward(jnp.copy(noise_param), donate=True)
    out_alias = jax.block_until_ready(out_alias)
    assert out_alias.shape == (batch_size, C, H, W)
    assert out_alias.dtype == expected.dtype
    assert bool(jnp.array_equal(out_alias, expected))

    print("KERNEL_OK")
</pallas_src>

<mosaic_0001>
module attributes {stable_mosaic.version = 11 : i64} {
  func.func @_copy_kernel(%arg0: i32, %arg1: memref<16x128xf32, #tpu.memory_space<vmem>>, %arg2: memref<16x128xf32, #tpu.memory_space<vmem>>) attributes {dimension_semantics = [#tpu.dimension_semantics<arbitrary>], iteration_bounds = array<i64: 1>, scalar_prefetch = 0 : i64, scratch_operands = 0 : i64, tpu.core_type = #tpu.core_type<tc>, window_params = [{transform_indices = @transform_0, window_bounds = array<i64: 16, 128>}, {transform_indices = @transform_1, window_bounds = array<i64: 16, 128>}]} {
    %c0 = arith.constant 0 : index
    %c0_0 = arith.constant 0 : index
    %0 = vector.load %arg1[%c0, %c0_0] : memref<16x128xf32, #tpu.memory_space<vmem>>, vector<16x128xf32>
    %c0_1 = arith.constant 0 : index
    %c0_2 = arith.constant 0 : index
    %1 = vector.load %arg2[%c0_1, %c0_2] : memref<16x128xf32, #tpu.memory_space<vmem>>, vector<16x128xf32>
    tpu.vector_store %arg2[%c0_1, %c0_2], %0 {strides = array<i32>} : memref<16x128xf32, #tpu.memory_space<vmem>>, vector<16x128xf32>,
    return
  }
  func.func @transform_0(%arg0: i32) -> (i32, i32) {
    %c0_i32 = arith.constant 0 : i32
    %c0_i32_0 = arith.constant 0 : i32
    return %arg0, %c0_i32 : i32, i32
  }
  func.func @transform_1(%arg0: i32) -> (i32, i32) {
    %c0_i32 = arith.constant 0 : i32
    %c0_i32_0 = arith.constant 0 : i32
    return %arg0, %c0_i32 : i32, i32
  }
}

</mosaic_0001>

<bundles_post_ra>
// kernel: tpu_custom_call.1
= control target key start
LH: loop header
LB: loop body
LE: loop exit
PB: predicated region body
PF: predicated region fallthrough
CT: control target
= control target key end

     0   :  { %6 = vsyncpa [#allocation3], 0  ;;  %s124_s0 = inlined_call_operand.hbm [shape: f32[16,128], index: 0, kind: input, shape index: {}]   ;;  %s125_s1 = inlined_call_operand.hbm [shape: f32[16,128], index: 1, kind: output, shape index: {}]  }
   0x1   :  { %7 = vsyncpa [#allocation4], 0  ;;  %s12_s8 = sshll.u32 %s124_s0, 4  ;;  %s104_s9 = smov [#allocation2]   ;;  %s13_s8 = int_to_ptr.hbm [resolvable:$true] %s12_s8 }
   0x2   :  { %s14_s10 = sshll.u32 %s104_s9, 4  ;;  %s105_s11 = smov 128   ;;  %s15_s10 = int_to_ptr.vmem [resolvable:$true] %s14_s10 }
   0x3   :  { %s106_s12 = smov 8  }
   0x4   :  { %20 = dma.hbm_to_vmem [thread:$0]  %s13_s8, 256, %s15_s10, [#allocation3], %s105_s11, %s105_s11, %s106_s12  }
   0x5   :  { %100 = dma.done.wait [#allocation3], 256  }
   0x6   :  { %101 = vsyncadd [#allocation3], 4294967040  ;;  %s107_s13 = smov [#allocation5]   ;;  %s35_s17 = sshll.u32 %s125_s1, 4  ;;  %v25_v0 = vld [vmem:[#allocation2] sm:$0xff]  ;;  %v26_v1 = vld [vmem:[#allocation2 + $0x8] sm:$0xff]  ;;  %s36_s17 = int_to_ptr.hbm [resolvable:$true] %s35_s17 }
   0x7   :  { %s33_s14 = sshll.u32 %s107_s13, 4  ;;  %27 = vst [vmem:[#allocation5] sm:$0xff] %v25_v0  ;;  %s34_s14 = int_to_ptr.vmem [resolvable:$true] %s33_s14 }
   0x8   :  { %28 = vst [vmem:[#allocation5 + $0x8] sm:$0xff] %v26_v1 }
   0x9   :  { %41 = dma.vmem_to_hbm [thread:$0]  %s34_s14, 256, %s36_s17, [#allocation4], %s105_s11, %s105_s11, %s106_s12  }
   0xa   :  { %102 = dma.done.wait [#allocation4], 256  }
   0xb   :  { %103 = vsyncadd [#allocation4], 4294967040 }
   0xc   :  { %46 = vsyncpa [#allocation3], 1 }
   0xd   :  { %47 = vsyncpa [#allocation4], 1 }

</bundles_post_ra>
